<compile_context>
chip_gen: v7x
topology: tpu7x:2x2x1
jax: 0.10.0
libtpu: 0.0.40
codegen_flags: <defaults>
</compile_context>

<pallas_src>
import functools

import jax
import jax.numpy as jnp
from jax.experimental import pallas as pl
from jax.experimental.pallas import tpu as pltpu


def _round_up(x, m):
    return (x + m - 1) // m * m


# -----------------------------------------------------------------------------
# Kernels
# -----------------------------------------------------------------------------
def _jumprelu_kernel_direct(x_ref, we_ref, bt_ref, wd_ref, bd_ref, o_ref):
    """f32-output variant: reconstruction accumulated directly in o_ref (the
    output block is resident across the d_sae grid axis), so no scratch."""
    j = pl.program_id(1)

    @pl.when(j == 0)
    def _():
        o_ref[...] = jnp.zeros_like(o_ref)

    # encode: pre = x @ W_enc + b_enc  (MXU, native operand dtype, f32 accum)
    pre = jnp.dot(x_ref[...], we_ref[...], preferred_element_type=jnp.float32)
    pre = pre + bt_ref[0:1, :].astype(jnp.float32)

    # JumpReLU gate: where(pre > threshold, relu(pre), 0) -- single select.
    acts = jnp.where(pre > bt_ref[1:2, :].astype(jnp.float32),
                     jnp.maximum(pre, 0.0), 0.0)

    # decode (partial over this d_sae slab): o += acts @ W_dec
    o_ref[...] += jnp.dot(acts.astype(wd_ref.dtype), wd_ref[...],
                          preferred_element_type=jnp.float32)

    @pl.when(j == pl.num_programs(1) - 1)
    def _():
        o_ref[...] += bd_ref[...].astype(o_ref.dtype)


def _jumprelu_kernel_scratch(x_ref, we_ref, bt_ref, wd_ref, bd_ref, o_ref, acc_ref):
    """Non-f32 output variant: f32 VMEM accumulator, cast on finalize."""
    j = pl.program_id(1)

    @pl.when(j == 0)
    def _():
        acc_ref[...] = jnp.zeros_like(acc_ref)

    pre = jnp.dot(x_ref[...], we_ref[...], preferred_element_type=jnp.float32)
    pre = pre + bt_ref[0:1, :].astype(jnp.float32)
    acts = jnp.where(pre > bt_ref[1:2, :].astype(jnp.float32),
                     jnp.maximum(pre, 0.0), 0.0)
    acc_ref[...] += jnp.dot(acts.astype(wd_ref.dtype), wd_ref[...],
                            preferred_element_type=jnp.float32)

    @pl.when(j == pl.num_programs(1) - 1)
    def _():
        o_ref[...] = (acc_ref[...] + bd_ref[...].astype(jnp.float32)).astype(o_ref.dtype)


# -----------------------------------------------------------------------------
# Generation-aware sizing
# -----------------------------------------------------------------------------
def _vmem_budget_bytes():
    """Per-generation VMEM budget (headroom left for Mosaic-internal scratch)."""
    cap = None
    try:
        info = pltpu.get_tpu_info()
        cap = int(getattr(info, "vmem_capacity_bytes"))
    except Exception:
        cap = None
    if cap is None:
        cap = 64 * 1024 * 1024              # unknown -> assume v7x-class (safe)
    if cap <= 64 * 1024 * 1024:
        return 48 * 1024 * 1024             # v7x: 64 MiB physical per TC
    return 100 * 1024 * 1024                # v5e / v6e: 128 MiB physical


def _choose_tiles(d_model, d_sae, x_it, w_it, o_it, budget, block_b, max_tile_sae=None):
    """Pick (bb_cap, ts): largest tiles whose double-buffered footprint fits the
    per-generation VMEM budget.  bb amortises the per-batch-tile weight stream;
    ts is the d_sae weight-slab width (multiple of 128, or the full d_sae)."""
    bb = max(8, _round_up(block_b, 8))
    # Keep W_enc slab segments >= ~2 KiB so the strided (d_model, ts) DMA stays
    # bandwidth-efficient when ts < d_sae.
    min_ts = min(_round_up(d_sae, 128),
                 max(128, _round_up((2048 + w_it - 1) // w_it, 128)))
    while True:
        fixed = (2 * bb * d_model * x_it        # x tile, double-buffered
                 + 2 * bb * d_model * o_it      # output tile, double-buffered
                 + bb * d_model * 4             # f32 acc scratch (worst case)
                 + 2 * d_model * w_it)          # b_dec, double-buffered
        per_ts = 2 * w_it * (2 * d_model + 2)   # W_enc + W_dec + fused (b_enc,thr)
        ts_max = (budget - fixed) // per_ts
        if ts_max >= min_ts or bb <= 8:
            break
        bb = max(8, _round_up(bb // 2, 8))      # shrink batch tile, retry
    ts = max(128, (int(ts_max) // 128) * 128)
    if max_tile_sae is not None:
        ts = min(ts, max(128, (int(max_tile_sae) // 128) * 128))
    if ts >= d_sae:
        ts = d_sae                              # single slab, no weight padding
    return bb, ts


# -----------------------------------------------------------------------------
# One-time parameter preparation (outside the per-call jit path)
# -----------------------------------------------------------------------------
def prepare_jumprelu_params(W_enc, b_enc, threshold, W_dec, b_dec, *,
                            block_b=1024, max_tile_sae=None, dtype=None):
    """Init-time prep: optional dtype cast (e.g. bf16 for the MXU fast path),
    pad d_sae once to a tile multiple, fuse (b_enc, threshold) into one (2, Sp)
    slab, and record the static tiling metadata."""
    if dtype is not None:
        W_enc = W_enc.astype(dtype)
        W_dec = W_dec.astype(dtype)
        b_enc = b_enc.astype(dtype)
        threshold = threshold.astype(dtype)
        b_dec = b_dec.astype(dtype)
    d_model, d_sae = W_enc.shape
    w_it = jnp.dtype(W_enc.dtype).itemsize
    budget = _vmem_budget_bytes()
    # Tile selection assumes the largest batch tile (block_b); actual calls may
    # use a smaller bb, which only shrinks the footprint.
    bb_cap, ts = _choose_tiles(d_model, d_sae, 4, w_it, 4, budget, block_b,
                               max_tile_sae=max_tile_sae)
    Sp = _round_up(d_sae, ts)
    if Sp > d_sae:
        # Padded features are inert: b_enc/threshold pad to 0 and the gate uses
        # a strict '>' (0 > 0 is False), so padded acts are exactly 0.
        W_enc = jnp.pad(W_enc, ((0, 0), (0, Sp - d_sae)))
        b_enc = jnp.pad(b_enc, (0, Sp - d_sae))
        threshold = jnp.pad(threshold, (0, Sp - d_sae))
        W_dec = jnp.pad(W_dec, ((0, Sp - d_sae), (0, 0)))
    bt = jnp.stack([b_enc, threshold], axis=0)      # fused (2, Sp) slab
    b_dec2 = b_dec.reshape(1, d_model)
    return dict(W_enc=W_enc, bt=bt, W_dec=W_dec, b_dec=b_dec2,
                meta=dict(ts=int(ts), block_b=int(bb_cap), budget=int(budget)))


# -----------------------------------------------------------------------------
# Forward
# -----------------------------------------------------------------------------
@functools.partial(jax.jit, static_argnames=("ts", "block_b", "budget"))
def _jumprelu_forward_impl(x, W_enc, bt, W_dec, b_dec, *, ts, block_b, budget):
    B, d_model = x.shape
    Sp = W_enc.shape[1]

    # ---- batch tile: as large as allowed to amortise the weight stream ----
    bb = max(8, min(_round_up(B, 8), block_b))
    # v7x megacore: if one huge tile covers the whole batch, split it in two so
    # the "parallel" batch axis can shard across both TensorCores.
    if bb >= 512 and _round_up(B, bb) == bb:
        bb = _round_up((bb + 1) // 2, 8)
    Bp = _round_up(B, bb)
    if Bp > B:
        x = jnp.pad(x, ((0, Bp - B), (0, 0)))

    grid = (Bp // bb, Sp // ts)
    out_dtype = x.dtype
    direct = (out_dtype == jnp.float32)
    kernel = _jumprelu_kernel_direct if direct else _jumprelu_kernel_scratch
    scratch = [] if direct else [pltpu.VMEM((bb, d_model), jnp.float32)]

    # ---- VMEM limit from the actual tile footprint, capped at the budget ----
    x_it = jnp.dtype(x.dtype).itemsize
    w_it = jnp.dtype(W_enc.dtype).itemsize
    o_it = jnp.dtype(out_dtype).itemsize
    footprint = (2 * bb * d_model * x_it                 # x tile (x2 buffers)
                 + 2 * bb * d_model * o_it               # out tile (x2 buffers)
                 + 2 * w_it * ts * (2 * d_model + 2)     # W_enc + W_dec + bt slabs
                 + 2 * d_model * w_it                    # b_dec
                 + (0 if direct else bb * d_model * 4))  # acc scratch
    vmem_limit = int(min(budget, max(int(1.25 * footprint), 32 * 1024 * 1024)))

    # ---- advisory cost estimate ----
    flops = 4 * Bp * d_model * Sp                        # two matmuls
    bytes_accessed = (Bp * d_model * (x_it + o_it)
                      + grid[0] * (2 * d_model * Sp + 2 * Sp + d_model) * w_it)
    cost = pl.CostEstimate(flops=int(flops), transcendentals=0,
                           bytes_accessed=int(bytes_accessed))

    out = pl.pallas_call(
        kernel,
        out_shape=jax.ShapeDtypeStruct((Bp, d_model), out_dtype),
        grid_spec=pltpu.PrefetchScalarGridSpec(
            num_scalar_prefetch=0,
            grid=grid,
            in_specs=[
                pl.BlockSpec((bb, d_model), lambda i, j: (i, 0)),   # x tile
                pl.BlockSpec((d_model, ts), lambda i, j: (0, j)),   # W_enc slab
                pl.BlockSpec((2, ts), lambda i, j: (0, j)),         # fused (b_enc, thr)
                pl.BlockSpec((ts, d_model), lambda i, j: (j, 0)),   # W_dec slab
                pl.BlockSpec((1, d_model), lambda i, j: (0, 0)),    # b_dec
            ],
            out_specs=pl.BlockSpec((bb, d_model), lambda i, j: (i, 0)),
            scratch_shapes=scratch,
        ),
        compiler_params=pltpu.CompilerParams(
            dimension_semantics=("parallel", "arbitrary"),
            vmem_limit_bytes=vmem_limit,
        ),
        cost_estimate=cost,
    )(x, W_enc, bt, W_dec, b_dec)

    return out[:B] if Bp > B else out


def jumprelu_sae_forward(x, params):
    """x: [B, d_model] -> recon: [B, d_model] (matches PyTorch JumpReLUSAE.forward)."""
    m = params["meta"]
    return _jumprelu_forward_impl(x, params["W_enc"], params["bt"], params["W_dec"],
                                  params["b_dec"], ts=m["ts"], block_b=m["block_b"],
                                  budget=m["budget"])


def _reference_forward(x, W_enc, b_enc, threshold, W_dec, b_dec):
    pre = x @ W_enc + b_enc
    mask = (pre > threshold).astype(x.dtype)
    acts = mask * jnp.maximum(pre, 0.0)
    return acts @ W_dec + b_dec


if __name__ == "__main__":
    # Small synthetic shapes consistent with the module's forward: acts are
    # [batch, d_model], d_sae hidden features.  batch deliberately not a tile
    # multiple (exercises padding); d_sae spans multiple slabs in the tiled run.
    batch, d_model, d_sae = 24, 128, 384

    key = jax.random.PRNGKey(0)
    kx, kwe, kbe, kth, kwd, kbd = jax.random.split(key, 6)

    x = jax.random.normal(kx, (batch, d_model), dtype=jnp.float32)
    # Deterministic, non-trivial params (the module's zero init would be degenerate).
    W_enc = jax.random.normal(kwe, (d_model, d_sae), dtype=jnp.float32) * 0.1
    b_enc = jax.random.normal(kbe, (d_sae,), dtype=jnp.float32) * 0.05
    threshold = jnp.abs(jax.random.normal(kth, (d_sae,), dtype=jnp.float32)) * 0.05
    W_dec = jax.random.normal(kwd, (d_sae, d_model), dtype=jnp.float32) * 0.1
    b_dec = jax.random.normal(kbd, (d_model,), dtype=jnp.float32) * 0.05

    ref = _reference_forward(x, W_enc, b_enc, threshold, W_dec, b_dec)

    # Path 1: auto-sized tiles (single d_sae slab, whole batch in one tile,
    # f32 output accumulated directly into o_ref).
    params = prepare_jumprelu_params(W_enc, b_enc, threshold, W_dec, b_dec)
    out_full = jax.block_until_ready(jumprelu_sae_forward(x, params))
    assert out_full.shape == (batch, d_model)
    assert jnp.allclose(out_full, ref, atol=2e-4, rtol=2e-4), "full-slab mismatch vs reference"

    # Path 2: force multi-slab d_sae streaming + multiple batch tiles
    # (exercises the accumulator init/finalize and batch padding).
    params_t = prepare_jumprelu_params(W_enc, b_enc, threshold, W_dec, b_dec,
                                       block_b=16, max_tile_sae=128)
    out_tiled = jax.block_until_ready(jumprelu_sae_forward(x, params_t))
    assert jnp.allclose(out_tiled, ref, atol=2e-4, rtol=2e-4), "tiled mismatch vs reference"

    # Path 3: bf16 operands (MXU fast path on v6e/v7x), f32 accumulation, bf16
    # output via the scratch-kernel variant.  Smoke test (looser numerics by design).
    params_bf = prepare_jumprelu_params(W_enc, b_enc, threshold, W_dec, b_dec,
                                        dtype=jnp.bfloat16, max_tile_sae=128)
    out_bf = jax.block_until_ready(jumprelu_sae_forward(x.astype(jnp.bfloat16), params_bf))
    assert out_bf.shape == (batch, d_model)
    assert bool(jnp.all(jnp.isfinite(out_bf.astype(jnp.float32))))

    print("KERNEL_OK")
</pallas_src>

<mosaic_0001>
module attributes {stable_mosaic.version = 11 : i64} {
  func.func @_jumprelu_kernel_direct(%arg0: i32, %arg1: i32, %arg2: memref<24x128xf32, #tpu.memory_space<vmem>>, %arg3: memref<128x384xf32, #tpu.memory_space<vmem>>, %arg4: memref<2x384xf32, #tpu.memory_space<vmem>>, %arg5: memref<384x128xf32, #tpu.memory_space<vmem>>, %arg6: memref<1x128xf32, #tpu.memory_space<vmem>>, %arg7: memref<24x128xf32, #tpu.memory_space<vmem>>) attributes {dimension_semantics = [#tpu.dimension_semantics<parallel>, #tpu.dimension_semantics<arbitrary>], iteration_bounds = array<i64: 1, 1>, scalar_prefetch = 0 : i64, scratch_operands = 0 : i64, tpu.core_type = #tpu.core_type<tc>, window_params = [{transform_indices = @transform_0, window_bounds = array<i64: 24, 128>}, {transform_indices = @transform_1, window_bounds = array<i64: 128, 384>}, {transform_indices = @transform_2, window_bounds = array<i64: 2, 384>}, {transform_indices = @transform_3, window_bounds = array<i64: 384, 128>}, {pipeline_mode = #tpu.pipeline_mode<synchronous>, transform_indices = @transform_4, window_bounds = array<i64: 1, 128>}, {transform_indices = @transform_5, window_bounds = array<i64: 24, 128>}]} {
    %c0_i32 = arith.constant 0 : i32
    %0 = arith.cmpi eq, %arg1, %c0_i32 : i32
    %1 = arith.extui %0 : i1 to i32
    %c0_i32_0 = arith.constant 0 : i32
    %2 = arith.cmpi ne, %1, %c0_i32_0 : i32
    scf.if %2 {
      %cst_18 = arith.constant 0.000000e+00 : f32
      %24 = vector.broadcast %cst_18 : f32 to vector<24x128xf32>
      %c0_19 = arith.constant 0 : index
      %c0_20 = arith.constant 0 : index
      %25 = vector.load %arg7[%c0_19, %c0_20] : memref<24x128xf32, #tpu.memory_space<vmem>>, vector<24x128xf32>
      tpu.vector_store %arg7[%c0_19, %c0_20], %24 {strides = array<i32>} : memref<24x128xf32, #tpu.memory_space<vmem>>, vector<24x128xf32>,
    } else {
    }
    %c0 = arith.constant 0 : index
    %c0_1 = arith.constant 0 : index
    %3 = vector.load %arg2[%c0, %c0_1] : memref<24x128xf32, #tpu.memory_space<vmem>>, vector<24x128xf32>
    %c0_2 = arith.constant 0 : index
    %c0_3 = arith.constant 0 : index
    %4 = vector.load %arg3[%c0_2, %c0_3] : memref<128x384xf32, #tpu.memory_space<vmem>>, vector<128x384xf32>
    %cst = arith.constant dense<0.000000e+00> : vector<24x384xf32>
    %5 = tpu.matmul %3, %4, %cst {dimension_numbers = #tpu.dot_dimension_numbers<[1], [0], [0], [1], [0, 0, 1, 1], [], []>} : vector<24x128xf32>, vector<128x384xf32>, vector<24x384xf32> -> vector<24x384xf32>
    %c0_4 = arith.constant 0 : index
    %c0_5 = arith.constant 0 : index
    %6 = vector.load %arg4[%c0_4, %c0_5] : memref<2x384xf32, #tpu.memory_space<vmem>>, vector<1x384xf32>
    %7 = vector.broadcast %6 : vector<1x384xf32> to vector<24x384xf32>
    %8 = arith.addf %5, %7 : vector<24x384xf32>
    %c1 = arith.constant 1 : index
    %c0_6 = arith.constant 0 : index
    %9 = vector.load %arg4[%c1, %c0_6] : memref<2x384xf32, #tpu.memory_space<vmem>>, vector<1x384xf32>
    %10 = vector.broadcast %9 : vector<1x384xf32> to vector<24x384xf32>
    %11 = arith.cmpf ogt, %8, %10 : vector<24x384xf32>
    %cst_7 = arith.constant 0.000000e+00 : f32
    %12 = vector.broadcast %cst_7 : f32 to vector<24x384xf32>
    %13 = arith.maximumf %8, %12 : vector<24x384xf32>
    %cst_8 = arith.constant 0.000000e+00 : f32
    %14 = vector.broadcast %cst_8 : f32 to vector<24x384xf32>
    %15 = arith.select %11, %13, %14 : vector<24x384xi1>, vector<24x384xf32>
    %c0_9 = arith.constant 0 : index
    %c0_10 = arith.constant 0 : index
    %16 = vector.load %arg7[%c0_9, %c0_10] : memref<24x128xf32, #tpu.memory_space<vmem>>, vector<24x128xf32>
    %c0_11 = arith.constant 0 : index
    %c0_12 = arith.constant 0 : index
    %17 = vector.load %arg5[%c0_11, %c0_12] : memref<384x128xf32, #tpu.memory_space<vmem>>, vector<384x128xf32>
    %cst_13 = arith.constant dense<0.000000e+00> : vector<24x128xf32>
    %18 = tpu.matmul %15, %17, %cst_13 {dimension_numbers = #tpu.dot_dimension_numbers<[1], [0], [0], [1], [0, 0, 1, 1], [], []>} : vector<24x384xf32>, vector<384x128xf32>, vector<24x128xf32> -> vector<24x128xf32>
    %19 = arith.addf %16, %18 : vector<24x128xf32>
    %c0_14 = arith.constant 0 : index
    %c0_15 = arith.constant 0 : index
    %20 = vector.load %arg7[%c0_14, %c0_15] : memref<24x128xf32, #tpu.memory_space<vmem>>, vector<24x128xf32>
    tpu.vector_store %arg7[%c0_14, %c0_15], %19 {strides = array<i32>} : memref<24x128xf32, #tpu.memory_space<vmem>>, vector<24x128xf32>,
    %c0_i32_16 = arith.constant 0 : i32
    %21 = arith.cmpi eq, %arg1, %c0_i32_16 : i32
    %22 = arith.extui %21 : i1 to i32
    %c0_i32_17 = arith.constant 0 : i32
    %23 = arith.cmpi ne, %22, %c0_i32_17 : i32
    scf.if %23 {
      %c0_18 = arith.constant 0 : index
      %c0_19 = arith.constant 0 : index
      %24 = vector.load %arg7[%c0_18, %c0_19] : memref<24x128xf32, #tpu.memory_space<vmem>>, vector<24x128xf32>
      %c0_20 = arith.constant 0 : index
      %c0_21 = arith.constant 0 : index
      %25 = vector.load %arg6[%c0_20, %c0_21] : memref<1x128xf32, #tpu.memory_space<vmem>>, vector<1x128xf32>
      %26 = vector.broadcast %25 : vector<1x128xf32> to vector<24x128xf32>
      %27 = arith.addf %24, %26 : vector<24x128xf32>
      %c0_22 = arith.constant 0 : index
      %c0_23 = arith.constant 0 : index
      %28 = vector.load %arg7[%c0_22, %c0_23] : memref<24x128xf32, #tpu.memory_space<vmem>>, vector<24x128xf32>
      tpu.vector_store %arg7[%c0_22, %c0_23], %27 {strides = array<i32>} : memref<24x128xf32, #tpu.memory_space<vmem>>, vector<24x128xf32>,
    } else {
    }
    return
  }
  func.func @transform_0(%arg0: i32, %arg1: i32) -> (i32, i32) {
    %c0_i32 = arith.constant 0 : i32
    %c0_i32_0 = arith.constant 0 : i32
    return %arg0, %c0_i32 : i32, i32
  }
  func.func @transform_1(%arg0: i32, %arg1: i32) -> (i32, i32) {
    %c0_i32 = arith.constant 0 : i32
    %c0_i32_0 = arith.constant 0 : i32
    return %c0_i32, %arg1 : i32, i32
  }
  func.func @transform_2(%arg0: i32, %arg1: i32) -> (i32, i32) {
    %c0_i32 = arith.constant 0 : i32
    %c0_i32_0 = arith.constant 0 : i32
    return %c0_i32, %arg1 : i32, i32
  }
  func.func @transform_3(%arg0: i32, %arg1: i32) -> (i32, i32) {
    %c0_i32 = arith.constant 0 : i32
    %c0_i32_0 = arith.constant 0 : i32
    return %arg1, %c0_i32 : i32, i32
  }
  func.func @transform_4(%arg0: i32, %arg1: i32) -> (i32, i32) {
    %c0_i32 = arith.constant 0 : i32
    %c0_i32_0 = arith.constant 0 : i32
    %c0_i32_1 = arith.constant 0 : i32
    return %c0_i32, %c0_i32_0 : i32, i32
  }
  func.func @transform_5(%arg0: i32, %arg1: i32) -> (i32, i32) {
    %c0_i32 = arith.constant 0 : i32
    %c0_i32_0 = arith.constant 0 : i32
    return %arg0, %c0_i32 : i32, i32
  }
}

</mosaic_0001>

<bundles_post_ra>
// kernel: _jumprelu_forward_impl.1
= control target key start
LH: loop header
LB: loop body
LE: loop exit
PB: predicated region body
PF: predicated region fallthrough
CT: control target
= control target key end

     0   :  { %10 = vsyncpa [#allocation3], 0  ;;  %s1126_s0 = inlined_call_operand.hbm [shape: f32[24,128], index: 0, kind: input, shape index: {}]   ;;  %s1127_s1 = inlined_call_operand.hbm [shape: f32[128,384], index: 1, kind: input, shape index: {}]   ;;  %s1128_s2 = inlined_call_operand.vmem [shape: f32[2,384], index: 2, kind: input, shape index: {}]   ;;  %s1129_s3 = inlined_call_operand.hbm [shape: f32[384,128], index: 3, kind: input, shape index: {}]   ;;  %s1130_s4 = inlined_call_operand.vmem [shape: f32[1,128], index: 4, kind: input, shape index: {}]   ;;  %s1131_s5 = inlined_call_operand.hbm [shape: f32[24,128], index: 5, kind: output, shape index: {}]  }
   0x1   :  { %11 = vsyncpa [#allocation6], 0 }
   0x2   :  { %12 = vsyncpa [#allocation4], 0  ;;  %s988_s18 = smov [#allocation5]   ;;  %s894_s22 = scalar_lea.hbm %s1127_s1, 6144 }
   0x3   :  { %s30_s19 = sshll.u32 %s988_s18, 4  ;;  %p895_p0 = scmp.ne.s32.totalorder %s1127_s1, %s894_s22  ;;  %s31_s19 = int_to_ptr.vmem [resolvable:$true] %s30_s19 }
   0x4   :  { %p898_p1 = scmp.lt.u32.totalorder %s894_s22, %s1127_s1 }
   0x6   :  { %p900_p2 = pnand %p898_p1, %p895_p0 }
   0x8   :  { %903 = shalt.err (!%p900_p2)
}
   0x9   :  { %s904_s27 = scalar_lea.vmem %s31_s19, 6144  ;;  %p909_p4 = scmp.lt.s32.totalorder %s31_s19, %s31_s19 }
   0xa   :  { %p905_p3 = scmp.ne.s32.totalorder %s31_s19, %s904_s27  ;;  %p910_p5 = scmp.lt.s32.totalorder %s904_s27, %s904_s27 }
   0xc   :  { %p911_p6 = por %p910_p5, %p909_p4 }
   0xe   :  { %p912_p7 = pnand %p911_p6, %p905_p3 }
  0x10   :  { %915 = shalt.err (!%p912_p7)
}
  0x11   :  { %s989_s28 = smov 384   ;;  %s990_s29 = smov 24  }
  0x12   :  { %36 = dma.hbm_to_vmem [thread:$0]  %s1127_s1, 6144, %s31_s19, [#allocation6], %s989_s28, %s989_s28, %s990_s29  }
  0x13   :  { %s991_s7 = smov [#allocation2]   ;;  %s916_s11 = scalar_lea.hbm %s1126_s0, 384 }
  0x14   :  { %s18_s8 = sshll.u32 %s991_s7, 4  ;;  %p917_p8 = scmp.ne.s32.totalorder %s1126_s0, %s916_s11  ;;  %s19_s8 = int_to_ptr.vmem [resolvable:$true] %s18_s8 }
  0x15   :  { %p920_p9 = scmp.lt.u32.totalorder %s916_s11, %s1126_s0 }
  0x17   :  { %p922_p10 = pnand %p920_p9, %p917_p8 }
  0x19   :  { %925 = shalt.err (!%p922_p10)
}
  0x1a   :  { %s926_s16 = scalar_lea.vmem %s19_s8, 384  ;;  %p931_p12 = scmp.lt.s32.totalorder %s19_s8, %s19_s8 }
  0x1b   :  { %p927_p11 = scmp.ne.s32.totalorder %s19_s8, %s926_s16  ;;  %p932_p13 = scmp.lt.s32.totalorder %s926_s16, %s926_s16 }
  0x1d   :  { %p933_p0 = por %p932_p13, %p931_p12 }
  0x1f   :  { %p934_p1 = pnand %p933_p0, %p927_p11 }
  0x21   :  { %937 = shalt.err (!%p934_p1)
}
  0x22   :  { %s992_s1 = smov 128   ;;  %s993_s17 = smov 8  }
  0x23   :  { %24 = dma.hbm_to_vmem [thread:$0]  %s1126_s0, 384, %s19_s8, [#allocation3], %s992_s1, %s992_s1, %s993_s17  }
  0x24   :  { %s994_s20 = smov [#allocation7]   ;;  %s938_s24 = scalar_lea.hbm %s1129_s3, 6144 }
  0x25   :  { %s44_s21 = sshll.u32 %s994_s20, 4  ;;  %p939_p2 = scmp.ne.s32.totalorder %s1129_s3, %s938_s24  ;;  %s45_s21 = int_to_ptr.vmem [resolvable:$true] %s44_s21 }
  0x26   :  { %p942_p3 = scmp.lt.u32.totalorder %s938_s24, %s1129_s3 }
  0x28   :  { %p944_p4 = pnand %p942_p3, %p939_p2 }
  0x2a   :  { %947 = shalt.err (!%p944_p4)
}
  0x2b   :  { %s948_s29 = scalar_lea.vmem %s45_s21, 6144  ;;  %p953_p6 = scmp.lt.s32.totalorder %s45_s21, %s45_s21 }
  0x2c   :  { %p949_p5 = scmp.ne.s32.totalorder %s45_s21, %s948_s29  ;;  %p954_p7 = scmp.lt.s32.totalorder %s948_s29, %s948_s29 }
  0x2e   :  { %p955_p8 = por %p954_p7, %p953_p6 }
  0x30   :  { %p956_p9 = pnand %p955_p8, %p949_p5 }
  0x32   :  { %959 = shalt.err (!%p956_p9)
}
  0x33   :  { %50 = dma.hbm_to_vmem [thread:$0]  %s1129_s3, 6144, %s45_s21, [#allocation6], %s992_s1, %s992_s1, %s993_s17  }
  0x34   :  { %982 = dma.done.wait [#allocation3], 384  }
  0x35   :  { %983 = vsyncadd [#allocation3], 4294966912 }
  0x36   :  { %984 = dma.done.wait [#allocation6], 12288  }
  0x37   :  { %985 = vsyncadd [#allocation6], 4294955008  ;;  %v995_v0 = vmov 0.0|0.0   ;;  %v996_v1 = vmov 0.0   ;;  %vm997_vm0 = vmmov 0   ;;  %v73_v2 = vld [vmem:[#allocation5 + $0x8] sm:$0xff] }
  0x38   :  { %803 = vmatprep.subr.bf16.mxu1 %v995_v0  ;;  %201 = vmatprep.mubr.f32.mxu0 %v996_v1  ;;  %v76_v3 = vld [vmem:[#allocation5 + $0x20] sm:$0xff]  ;;  %v75_v6 = vld [vmem:[#allocation5 + $0x18] sm:$0xff]  ;;  %v82_v8 = vld [vmem:[#allocation5 + $0x50] sm:$0xff]  ;;  %s998_s10 = smov [#allocation8]  }
  0x39   :  { %721 = vmatprep.mubr.msk.f32.mxu1 %vm997_vm0, %v996_v1  ;;  %v72_v4 = vld [vmem:[#allocation5] sm:$0xff]  ;;  %v771_v5 = vpack.c.bf16 %v76_v3, %v73_v2  ;;  %v79_v7 = vld [vmem:[#allocation5 + $0x38] sm:$0xff]  ;;  %v74_v11 = vld [vmem:[#allocation5 + $0x10] sm:$0xff]  ;;  %s586_s11 = sshll.u32 %s998_s10, 4  ;;  %s587_s11 = int_to_ptr.vmem [resolvable:$true] %s586_s11 }
  0x3a   :  { %v773_v9 = vpack.c.bf16 %v75_v6, %v72_v4  ;;  %v775_v10 = vpack.c.bf16 %v82_v8, %v79_v7  ;;  %v77_v12 = vld [vmem:[#allocation5 + $0x28] sm:$0xff]  ;;  %v78_v13 = vld [vmem:[#allocation5 + $0x30] sm:$0xff]  ;;  %v88_v17 = vld [vmem:[#allocation5 + $0x80] sm:$0xff]  ;;  %s960_s12 = scalar_lea.vmem %s587_s11, 384  ;;  %p965_p11 = scmp.lt.s32.totalorder %s587_s11, %s587_s11 }
  0x3b   :  { %772 = vmatprep.subr.bf16.mxu0 %v771_v5  ;;  %v804_v14 = vpack.c.bf16 %v77_v12, %v74_v11  ;;  %v81_v15 = vld [vmem:[#allocation5 + $0x48] sm:$0xff]  ;;  %v80_v19 = vld [vmem:[#allocation5 + $0x40] sm:$0xff]  ;;  %v83_v20 = vld [vmem:[#allocation5 + $0x58] sm:$0xff]  ;;  %p961_p10 = scmp.ne.s32.totalorder %s587_s11, %s960_s12  ;;  %p966_p12 = scmp.lt.s32.totalorder %s960_s12, %s960_s12 }
  0x3c   :  { %v85_v16 = vld [vmem:[#allocation5 + $0x68] sm:$0xff]  ;;  %774 = vmatpush1.bf16.msra.mxu0 %v773_v9  ;;  %v777_v18 = vpack.c.bf16 %v81_v15, %v78_v13  ;;  %v807_v22 = vpack.c.bf16 %v83_v20, %v80_v19  ;;  %v84_v23 = vld [vmem:[#allocation5 + $0x60] sm:$0xff]  ;;  %v87_v24 = vld [vmem:[#allocation5 + $0x78] sm:$0xff] }
  0x3d   :  { %776 = vmatprep.subr.bf16.mxu0 %v775_v10  ;;  %805 = vmatpush3.bf16.msra.mxu1 %v804_v14  ;;  %v779_v21 = vpack.c.bf16 %v88_v17, %v85_v16  ;;  %v91_v25 = vld [vmem:[#allocation5 + $0x98] sm:$0xff]  ;;  %v94_v26 = vld [vmem:[#allocation5 + $0xb0] sm:$0xff]  ;;  %v89_v28 = vld [vmem:[#allocation5 + $0x88] sm:$0xff]  ;;  %v781_v29 = vpack.c.bf16 %v87_v24, %v84_v23  ;;  %p967_p13 = por %p966_p12, %p965_p11 }
  0x3e   :  { %806 = vmatprep.subr.bf16.mxu1 %v995_v0  ;;  %v86_v27 = vld [vmem:[#allocation5 + $0x70] sm:$0xff]  ;;  %v783_v30 = vpack.c.bf16 %v94_v26, %v91_v25  ;;  %v93_v33 = vld [vmem:[#allocation5 + $0xa8] sm:$0xff]  ;;  %v100_v35 = vld [vmem:[#allocation5 + $0xe0] sm:$0xff] }
  0x3f   :  { %v810_v31 = vpack.c.bf16 %v89_v28, %v86_v27  ;;  %v90_v32 = vld [vmem:[#allocation5 + $0x90] sm:$0xff]  ;;  %v97_v34 = vld [vmem:[#allocation5 + $0xc8] sm:$0xff]  ;;  %v92_v36 = vld [vmem:[#allocation5 + $0xa0] sm:$0xff]  ;;  %p968_p0 = pnand %p967_p13, %p961_p10 }
  0x40   :  { %778 = vmatpush1.bf16.msra.mxu0 %v777_v18  ;;  %v95_v37 = vld [vmem:[#allocation5 + $0xb8] sm:$0xff]  ;;  %v785_v38 = vpack.c.bf16 %v93_v33, %v90_v32  ;;  %v787_v39 = vpack.c.bf16 %v100_v35, %v97_v34  ;;  %v96_v41 = vld [vmem:[#allocation5 + $0xc0] sm:$0xff]  ;;  %v106_v44 = vld [vmem:[#allocation5 + $0x110] sm:$0xff] }
  0x41   :  { %780 = vmatprep.subr.bf16.mxu0 %v779_v21  ;;  %808 = vmatpush3.bf16.msra.mxu1 %v807_v22  ;;  %v813_v40 = vpack.c.bf16 %v95_v37, %v92_v36  ;;  %v99_v42 = vld [vmem:[#allocation5 + $0xd8] sm:$0xff]  ;;  %v98_v45 = vld [vmem:[#allocation5 + $0xd0] sm:$0xff]  ;;  %v101_v46 = vld [vmem:[#allocation5 + $0xe8] sm:$0xff] }
  0x42   :  { %809 = vmatprep.subr.bf16.mxu1 %v995_v0  ;;  %v103_v43 = vld [vmem:[#allocation5 + $0xf8] sm:$0xff]  ;;  %v789_v47 = vpack.c.bf16 %v99_v42, %v96_v41  ;;  %v816_v49 = vpack.c.bf16 %v101_v46, %v98_v45  ;;  %v102_v50 = vld [vmem:[#allocation5 + $0xf0] sm:$0xff]  ;;  %v105_v51 = vld [vmem:[#allocation5 + $0x108] sm:$0xff] }
  0x43   :  { %v791_v48 = vpack.c.bf16 %v106_v44, %v103_v43  ;;  %v109_v52 = vld [vmem:[#allocation5 + $0x128] sm:$0xff]  ;;  %v112_v53 = vld [vmem:[#allocation5 + $0x140] sm:$0xff]  ;;  %v107_v55 = vld [vmem:[#allocation5 + $0x118] sm:$0xff]  ;;  %v793_v56 = vpack.c.bf16 %v105_v51, %v102_v50 }
  0x44   :  { %782 = vmatpush1.bf16.msra.mxu0 %v781_v29  ;;  %v104_v54 = vld [vmem:[#allocation5 + $0x100] sm:$0xff]  ;;  %v795_v57 = vpack.c.bf16 %v112_v53, %v109_v52  ;;  %v111_v60 = vld [vmem:[#allocation5 + $0x138] sm:$0xff]  ;;  %v118_v62 = vld [vmem:[#allocation5 + $0x170] sm:$0xff] }
  0x45   :  { %784 = vmatprep.subr.bf16.mxu0 %v783_v30  ;;  %811 = vmatpush3.bf16.msra.mxu1 %v810_v31  ;;  %v819_v58 = vpack.c.bf16 %v107_v55, %v104_v54  ;;  %v108_v59 = vld [vmem:[#allocation5 + $0x120] sm:$0xff]  ;;  %v115_v61 = vld [vmem:[#allocation5 + $0x158] sm:$0xff]  ;;  %v110_v63 = vld [vmem:[#allocation5 + $0x130] sm:$0xff] }
  0x46   :  { %812 = vmatprep.subr.bf16.mxu1 %v995_v0  ;;  %v113_v2 = vld [vmem:[#allocation5 + $0x148] sm:$0xff]  ;;  %v797_v3 = vpack.c.bf16 %v111_v60, %v108_v59  ;;  %v799_v4 = vpack.c.bf16 %v118_v62, %v115_v61  ;;  %v114_v6 = vld [vmem:[#allocation5 + $0x150] sm:$0xff]  ;;  %v116_v8 = vld [vmem:[#allocation5 + $0x160] sm:$0xff] }
  0x47   :  { %v822_v5 = vpack.c.bf16 %v113_v2, %v110_v63  ;;  %v117_v7 = vld [vmem:[#allocation5 + $0x168] sm:$0xff]  ;;  %v119_v9 = vld [vmem:[#allocation5 + $0x178] sm:$0xff]  ;;  %v364_v10 = vld [vmem:[#allocation7 + $0x80] sm:$0xff] }
  0x48   :  { %786 = vmatpush1.bf16.msra.mxu0 %v785_v38  ;;  %v365_v11 = vld [vmem:[#allocation7 + $0x88] sm:$0xff]  ;;  %v801_v12 = vpack.c.bf16 %v117_v7, %v114_v6  ;;  %v825_v13 = vpack.c.bf16 %v119_v9, %v116_v8  ;;  %v348_v15 = vld [vmem:[#allocation7] sm:$0xff]  ;;  %v366_v19 = vld [vmem:[#allocation7 + $0x90] sm:$0xff] }
  0x49   :  { %788 = vmatprep.subr.bf16.mxu0 %v787_v39  ;;  %814 = vmatpush3.bf16.msra.mxu1 %v813_v40  ;;  %v827_v14 = vpack.c.bf16 %v365_v11, %v364_v10  ;;  %v349_v16 = vld [vmem:[#allocation7 + $0x8] sm:$0xff]  ;;  %v380_v17 = vld [vmem:[#allocation7 + $0x100] sm:$0xff]  ;;  %v367_v20 = vld [vmem:[#allocation7 + $0x98] sm:$0xff] }
  0x4a   :  { %815 = vmatprep.subr.bf16.mxu1 %v995_v0  ;;  %v381_v18 = vld [vmem:[#allocation7 + $0x108] sm:$0xff]  ;;  %v829_v22 = vpack.c.bf16 %v349_v16, %v348_v15  ;;  %v831_v24 = vpack.c.bf16 %v367_v20, %v366_v19  ;;  %v350_v25 = vld [vmem:[#allocation7 + $0x10] sm:$0xff]  ;;  %v351_v26 = vld [vmem:[#allocation7 + $0x18] sm:$0xff] }
  0x4b   :  { %v69_v21 = vld [vmem:[#allocation2] sm:$0xff]  ;;  %v860_v23 = vpack.c.bf16 %v381_v18, %v380_v17  ;;  %v382_v27 = vld [vmem:[#allocation7 + $0x110] sm:$0xff]  ;;  %v383_v28 = vld [vmem:[#allocation7 + $0x118] sm:$0xff]  ;;  %v833_v32 = vpack.c.bf16 %v351_v26, %v350_v25  ;;  %v122_v25 = vlaneseq }
  0x4c   :  { %790 = vmatpush1.bf16.msra.mxu0 %v789_v47  ;;  %v368_v29 = vld [vmem:[#allocation7 + $0xa0] sm:$0xff]  ;;  %v369_v30 = vld [vmem:[#allocation7 + $0xa8] sm:$0xff]  ;;  %v70_v31 = vld [vmem:[#allocation2 + $0x8] sm:$0xff]  ;;  %v863_v33 = vpack.c.bf16 %v383_v28, %v382_v27 }
  0x4d   :  { %792 = vmatprep.subr.bf16.mxu0 %v791_v48  ;;  %817 = vmatpush3.bf16.msra.mxu1 %v816_v49  ;;  %v835_v34 = vpack.c.bf16 %v369_v30, %v368_v29  ;;  %v352_v35 = vld [vmem:[#allocation7 + $0x20] sm:$0xff]  ;;  %v353_v36 = vld [vmem:[#allocation7 + $0x28] sm:$0xff]  ;;  %v370_v39 = vld [vmem:[#allocation7 + $0xb0] sm:$0xff]  ;;  %v123_v26 = vshrl.u32 %v122_v25, 7 }
  0x4e   :  { %818 = vmatprep.subr.bf16.mxu1 %v995_v0  ;;  %v384_v37 = vld [vmem:[#allocation7 + $0x120] sm:$0xff]  ;;  %v385_v38 = vld [vmem:[#allocation7 + $0x128] sm:$0xff]  ;;  %v371_v40 = vld [vmem:[#allocation7 + $0xb8] sm:$0xff]  ;;  %v837_v42 = vpack.c.bf16 %v353_v36, %v352_v35 }
  0x4f   :  { %v71_v41 = vld [vmem:[#allocation2 + $0x10] sm:$0xff]  ;;  %v866_v43 = vpack.c.bf16 %v385_v38, %v384_v37  ;;  %v839_v44 = vpack.c.bf16 %v371_v40, %v370_v39  ;;  %v354_v45 = vld [vmem:[#allocation7 + $0x30] sm:$0xff]  ;;  %v372_v49 = vld [vmem:[#allocation7 + $0xc0] sm:$0xff]  ;;  %v124_v27 = vsub.s32 0, %v123_v26  ;;  %v128_v29 = vsub.s32 1, %v123_v26 }
  0x50   :  { %794 = vmatpush1.bf16.msra.mxu0 %v793_v56  ;;  %v355_v46 = vld [vmem:[#allocation7 + $0x38] sm:$0xff]  ;;  %v386_v47 = vld [vmem:[#allocation7 + $0x130] sm:$0xff]  ;;  %v373_v50 = vld [vmem:[#allocation7 + $0xc8] sm:$0xff]  ;;  %v132_v30 = vsub.s32 2, %v123_v26 }
  0x51   :  { %796 = vmatprep.subr.bf16.mxu0 %v795_v57  ;;  %820 = vmatpush3.bf16.msra.mxu1 %v819_v58  ;;  %v387_v48 = vld [vmem:[#allocation7 + $0x138] sm:$0xff]  ;;  %v841_v51 = vpack.c.bf16 %v355_v46, %v354_v45  ;;  %v843_v53 = vpack.c.bf16 %v373_v50, %v372_v49  ;;  %v356_v54 = vld [vmem:[#allocation7 + $0x40] sm:$0xff]  ;;  %v357_v55 = vld [vmem:[#allocation7 + $0x48] sm:$0xff] }
  0x52   :  { %821 = vmatprep.subr.bf16.mxu1 %v995_v0  ;;  %v869_v52 = vpack.c.bf16 %v387_v48, %v386_v47  ;;  %v388_v56 = vld [vmem:[#allocation7 + $0x140] sm:$0xff]  ;;  %v389_v57 = vld [vmem:[#allocation7 + $0x148] sm:$0xff]  ;;  %v374_v58 = vld [vmem:[#allocation7 + $0xd0] sm:$0xff]  ;;  %v845_v60 = vpack.c.bf16 %v357_v55, %v356_v54 }
  0x53   :  { %v375_v59 = vld [vmem:[#allocation7 + $0xd8] sm:$0xff]  ;;  %v872_v61 = vpack.c.bf16 %v389_v57, %v388_v56  ;;  %v358_v63 = vld [vmem:[#allocation7 + $0x50] sm:$0xff]  ;;  %v377_v6 = vld [vmem:[#allocation7 + $0xe8] sm:$0xff] }
  0x54   :  { %798 = vmatpush1.bf16.msra.mxu0 %v797_v3  ;;  %v847_v62 = vpack.c.bf16 %v375_v59, %v374_v58  ;;  %v359_v2 = vld [vmem:[#allocation7 + $0x58] sm:$0xff]  ;;  %v390_v3 = vld [vmem:[#allocation7 + $0x150] sm:$0xff]  ;;  %v360_v10 = vld [vmem:[#allocation7 + $0x60] sm:$0xff] }
  0x55   :  { %800 = vmatprep.subr.bf16.mxu0 %v799_v4  ;;  %823 = vmatpush3.bf16.msra.mxu1 %v822_v5  ;;  %v391_v4 = vld [vmem:[#allocation7 + $0x158] sm:$0xff]  ;;  %v376_v5 = vld [vmem:[#allocation7 + $0xe0] sm:$0xff]  ;;  %v849_v7 = vpack.c.bf16 %v359_v2, %v358_v63  ;;  %v361_v11 = vld [vmem:[#allocation7 + $0x68] sm:$0xff] }
  0x56   :  { %824 = vmatprep.subr.bf16.mxu1 %v995_v0  ;;  %v875_v8 = vpack.c.bf16 %v391_v4, %v390_v3  ;;  %v851_v9 = vpack.c.bf16 %v377_v6, %v376_v5  ;;  %v378_v16 = vld [vmem:[#allocation7 + $0xf0] sm:$0xff]  ;;  %v379_v17 = vld [vmem:[#allocation7 + $0xf8] sm:$0xff]  ;;  %v120_v28 = vld [vmem:[%s1128_s2] ss:$2 sm:$0x7] }
  0x57   :  { %v855_v18 = vpack.c.bf16 %v379_v17, %v378_v16  ;;  %v362_v19 = vld [vmem:[#allocation7 + $0x70] sm:$0xff]  ;;  %v363_v20 = vld [vmem:[#allocation7 + $0x78] sm:$0xff] }
  0x58   :  { %802 = vmatpush1.bf16.msra.mxu0 %v801_v12  ;;  %v853_v12 = vpack.c.bf16 %v361_v11, %v360_v10 }
  0x59   :  { %826 = vmatpush3.bf16.msra.mxu1 %v825_v13  ;;  %828 = vmatprep.subr.bf16.mxu0 %v827_v14  ;;  %v392_v13 = vld [vmem:[#allocation7 + $0x160] sm:$0xff]  ;;  %v393_v14 = vld [vmem:[#allocation7 + $0x168] sm:$0xff] }
  0x5a   :  { %859 = vmatprep.subr.bf16.mxu1 %v995_v0  ;;  %v878_v15 = vpack.c.bf16 %v393_v14, %v392_v13 }
  0x5b   :  { %202 = vmatmul.mubr.f32.vlgmr.msra.gmra.mrb[0].mxu0 %v69_v21 }
  0x5c   :  { %207 = vmatprep.mubr.f32.mxu0 %v996_v1  ;;  %722 = vmatmul.mubr.f32.vlgmr.msra.gmra.mrb[0].mxu1 %v69_v21  ;;  %v857_v21 = vpack.c.bf16 %v363_v20, %v362_v19 }
  0x5d   :  { %724 = vmatprep.mubr.msk.f32.mxu1 %vm997_vm0, %v996_v1  ;;  %830 = vmatpush3.bf16.msra.mxu0 %v829_v22  ;;  %v394_v22 = vld [vmem:[#allocation7 + $0x170] sm:$0xff] }
  0x5e   :  { %861 = vmatpush3.bf16.msra.mxu1 %v860_v23  ;;  %832 = vmatprep.subr.bf16.mxu0 %v831_v24  ;;  %v395_v23 = vld [vmem:[#allocation7 + $0x178] sm:$0xff] }
  0x5f   :  { %208 = vmatmul.mubr.f32.gmra.mrb[2].mxu0 %v70_v31  ;;  %862 = vmatprep.subr.bf16.mxu1 %v995_v0  ;;  %v881_v24 = vpack.c.bf16 %v395_v23, %v394_v22 }
  0x60   :  { %213 = vmatprep.mubr.f32.mxu0 %v996_v1  ;;  %725 = vmatmul.mubr.f32.gmra.mrb[2].mxu1 %v70_v31  ;;  %v125_v31 = vrot.slane %v120_v28, %v124_v27 }
  0x61   :  { %727 = vmatprep.mubr.msk.f32.mxu1 %vm997_vm0, %v996_v1  ;;  %834 = vmatpush3.bf16.msra.mxu0 %v833_v32  ;;  %v129_v32 = vrot.slane %v120_v28, %v128_v29 }
  0x62   :  { %864 = vmatpush3.bf16.msra.mxu1 %v863_v33  ;;  %836 = vmatprep.subr.bf16.mxu0 %v835_v34  ;;  %v133_v33 = vrot.slane %v120_v28, %v132_v30 }
  0x63   :  { %214 = vmatmul.mubr.f32.gmra.mrb[4].mxu0 %v71_v41  ;;  %865 = vmatprep.subr.bf16.mxu1 %v995_v0 }
  0x64   :  { %728 = vmatmul.mubr.f32.gmra.mrb[4].mxu1 %v71_v41 }
  0x65   :  { %838 = vmatpush3.bf16.msra.mxu0 %v837_v42  ;;  %762 = vmatprep.mubr.msk.f32.mxu1 %vm997_vm0, %v996_v1 }
  0x66   :  { %867 = vmatpush3.bf16.msra.mxu1 %v866_v43  ;;  %840 = vmatprep.subr.bf16.mxu0 %v839_v44 }
  0x67   :  { %868 = vmatprep.subr.bf16.mxu1 %v995_v0 }
  0x69   :  { %842 = vmatpush3.bf16.msra.mxu0 %v841_v51 }
  0x6a   :  { %870 = vmatpush3.bf16.msra.mxu1 %v869_v52  ;;  %844 = vmatprep.subr.bf16.mxu0 %v843_v53 }
  0x6b   :  { %871 = vmatprep.subr.bf16.mxu1 %v995_v0 }
  0x6d   :  { %846 = vmatpush3.bf16.msra.mxu0 %v845_v60 }
  0x6e   :  { %873 = vmatpush3.bf16.msra.mxu1 %v872_v61  ;;  %848 = vmatprep.subr.bf16.mxu0 %v847_v62 }
  0x6f   :  { %874 = vmatprep.subr.bf16.mxu1 %v995_v0 }
  0x71   :  { %850 = vmatpush3.bf16.msra.mxu0 %v849_v7 }
  0x72   :  { %876 = vmatpush3.bf16.msra.mxu1 %v875_v8  ;;  %852 = vmatprep.subr.bf16.mxu0 %v851_v9 }
  0x73   :  { %877 = vmatprep.subr.bf16.mxu1 %v995_v0 }
  0x75   :  { %854 = vmatpush3.bf16.msra.mxu0 %v853_v12 }
  0x76   :  { %879 = vmatpush3.bf16.msra.mxu1 %v878_v15  ;;  %856 = vmatprep.subr.bf16.mxu0 %v855_v18 }
  0x77   :  { %880 = vmatprep.subr.bf16.mxu1 %v995_v0  ;;  %v599_v0 = vld [vmem:[%s1128_s2 + $0x1] ss:$2 sm:$0x7] }
  0x78   :  { %v310_v35 = vrot.slane %v599_v0, %v128_v29  ;;  %v314_v36 = vrot.slane %v599_v0, %v132_v30  ;;  %v306_v40 = vrot.slane %v599_v0, %v124_v27 }
  0x79   :  { %858 = vmatpush3.bf16.msra.mxu0 %v857_v21 }
  0x7a   :  { %882 = vmatpush3.bf16.msra.mxu1 %v881_v24 }
 0x12e   :  { %v203_v34 = vpop.f32.mrb[0].mxu0 }
 0x12f   :  { %v204_v37 = vadd.f32 %v203_v34, %v125_v31  ;;  %v205_v38 = vpop.f32.mrb[1].mxu0  ;;  %v286_v39 = vpop.f32.mrb[0].mxu1 }
 0x130   :  { %v206_v41 = vadd.f32 %v205_v38, %v129_v32  ;;  %v287_v42 = vadd.f32 %v286_v39, %v133_v33  ;;  %v723_v43 = vpop.f32.mrb[1].mxu1 }
 0x131   :  { %v327_v47 = vmax.f32 %v204_v37, 0.0  ;;  %vm318_vm3 = vcmp.gt.f32.partialorder %v204_v37, %v306_v40 }
 0x132   :  { %vm319_vm1 = vcmp.gt.f32.partialorder %v206_v41, %v310_v35  ;;  %v328_v44 = vmax.f32 %v206_v41, 0.0  ;;  %vm320_vm2 = vcmp.gt.f32.partialorder %v287_v42, %v314_v36  ;;  %v329_v45 = vmax.f32 %v287_v42, 0.0  ;;  %v209_v46 = vpop.f32.mrb[2].mxu0 }
 0x133   :  { %v210_v48 = vadd.f32 %v209_v46, %v125_v31  ;;  %v211_v49 = vpop.f32.mrb[3].mxu0  ;;  %v291_v50 = vpop.f32.mrb[2].mxu1 }
 0x134   :  { %v212_v51 = vadd.f32 %v211_v49, %v129_v32  ;;  %600 = vmatprep.mubr.msk.f32.mxu0 %vm319_vm1, %v328_v44  ;;  %v292_v52 = vadd.f32 %v291_v50, %v133_v33  ;;  %763 = vmatmul.mubr.msk.f32.vlgmr.msra.gmra.mrb[6].mxu1 %vm320_vm2, %v329_v45  ;;  %v726_v53 = vpop.f32.mrb[3].mxu1 }
 0x135   :  { %601 = vmatmul.mubr.msk.f32.vlgmr.msra.gmra.mrb[6].mxu0 %vm318_vm3, %v327_v47  ;;  %765 = vmatprep.mubr.msk.f32.mxu1 %vm997_vm0, %v996_v1  ;;  %v330_v57 = vmax.f32 %v210_v48, 0.0  ;;  %vm321_vm6 = vcmp.gt.f32.partialorder %v210_v48, %v306_v40 }
 0x136   :  { %vm322_vm4 = vcmp.gt.f32.partialorder %v212_v51, %v310_v35  ;;  %v331_v54 = vmax.f32 %v212_v51, 0.0  ;;  %vm323_vm5 = vcmp.gt.f32.partialorder %v292_v52, %v314_v36  ;;  %v332_v55 = vmax.f32 %v292_v52, 0.0  ;;  %v215_v56 = vpop.f32.mrb[4].mxu0 }
 0x137   :  { %v216_v58 = vadd.f32 %v215_v56, %v125_v31  ;;  %v217_v59 = vpop.f32.mrb[5].mxu0  ;;  %v296_v60 = vpop.f32.mrb[4].mxu1 }
 0x138   :  { %v218_v61 = vadd.f32 %v217_v59, %v129_v32  ;;  %602 = vmatprep.mubr.msk.f32.mxu0 %vm322_vm4, %v331_v54  ;;  %v297_v62 = vadd.f32 %v296_v60, %v133_v33  ;;  %766 = vmatmul.mubr.msk.f32.gmra.mrb[8].mxu1 %vm323_vm5, %v332_v55  ;;  %v729_v63 = vpop.f32.mrb[5].mxu1 }
 0x139   :  { %603 = vmatmul.mubr.msk.f32.gmra.mrb[8].mxu0 %vm321_vm6, %v330_v57  ;;  %768 = vmatprep.mubr.msk.f32.mxu1 %vm997_vm0, %v996_v1  ;;  %v333_v4 = vmax.f32 %v216_v58, 0.0  ;;  %vm324_vm9 = vcmp.gt.f32.partialorder %v216_v58, %v306_v40  ;;  %v609_v1 = vld [vmem:[%s1130_s4] ss:$0 sm:$0xff] }
 0x13a   :  { %vm325_vm7 = vcmp.gt.f32.partialorder %v218_v61, %v310_v35  ;;  %v334_v2 = vmax.f32 %v218_v61, 0.0  ;;  %vm326_vm8 = vcmp.gt.f32.partialorder %v297_v62, %v314_v36  ;;  %v335_v3 = vmax.f32 %v297_v62, 0.0 }
 0x13c   :  { %604 = vmatprep.mubr.msk.f32.mxu0 %vm325_vm7, %v334_v2  ;;  %769 = vmatmul.mubr.msk.f32.gmra.mrb[10].mxu1 %vm326_vm8, %v335_v3 }
 0x13d   :  { %605 = vmatmul.mubr.msk.f32.gmra.mrb[10].mxu0 %vm324_vm9, %v333_v4 }
 0x207   :  { %v542_v5 = vpop.f32.mrb[6].mxu1 }
 0x208   :  { %v661_v6 = vpop.f32.mrb[6].mxu0  ;;  %v764_v7 = vpop.f32.mrb[7].mxu1 }
 0x209   :  { %v662_v8 = vpop.f32.mrb[7].mxu0 }
 0x20a   :  { %v663_v9 = vadd.f32 %v662_v8, %v661_v6 }
 0x20b   :  { %v547_v10 = vpop.f32.mrb[8].mxu1 }
 0x20c   :  { %v543_v11 = vadd.f32 %v663_v9, %v542_v5  ;;  %v664_v12 = vpop.f32.mrb[8].mxu0  ;;  %v767_v13 = vpop.f32.mrb[9].mxu1 }
 0x20d   :  { %v665_v14 = vpop.f32.mrb[9].mxu0 }
 0x20e   :  { %v666_v15 = vadd.f32 %v665_v14, %v664_v12  ;;  %v575_v20 = vadd.f32 %v609_v1, %v543_v11 }
 0x20f   :  { %v552_v16 = vpop.f32.mrb[10].mxu1 }
 0x210   :  { %v548_v17 = vadd.f32 %v666_v15, %v547_v10  ;;  %v667_v18 = vpop.f32.mrb[10].mxu0  ;;  %v770_v19 = vpop.f32.mrb[11].mxu1  ;;  %578 = vst [vmem:[#allocation8] sm:$0xff] %v575_v20 }
 0x211   :  { %v668_v21 = vpop.f32.mrb[11].mxu0 }
 0x212   :  { %v669_v22 = vadd.f32 %v668_v21, %v667_v18  ;;  %v576_v24 = vadd.f32 %v609_v1, %v548_v17 }
 0x214   :  { %v553_v23 = vadd.f32 %v669_v22, %v552_v16  ;;  %579 = vst [vmem:[#allocation8 + $0x8] sm:$0xff] %v576_v24 }
 0x216   :  { %v577_v25 = vadd.f32 %v609_v1, %v553_v23 }
 0x218   :  { %580 = vst [vmem:[#allocation8 + $0x10] sm:$0xff] %v577_v25 }
 0x219   :  { %971 = shalt.err (!%p968_p0)
}
 0x21a   :  { %s972_s14 = scalar_lea.hbm %s1131_s5, 384 }
 0x21b   :  { %p973_p1 = scmp.ne.s32.totalorder %s1131_s5, %s972_s14  ;;  %p976_p2 = scmp.lt.u32.totalorder %s972_s14, %s1131_s5 }
 0x21d   :  { %p978_p3 = pnand %p976_p2, %p973_p1 }
 0x21f   :  { %981 = shalt.err (!%p978_p3)
}
 0x220   :  { %592 = dma.vmem_to_hbm [thread:$0]  %s587_s11, 384, %s1131_s5, [#allocation4], %s992_s1, %s992_s1, %s993_s17  }
 0x221   :  { %986 = dma.done.wait [#allocation4], 384  }
 0x222   :  { %987 = vsyncadd [#allocation4], 4294966912 }
 0x223   :  { %596 = vsyncpa [#allocation3], 1 }
 0x224   :  { %597 = vsyncpa [#allocation6], 1 }
 0x225   :  { %598 = vsyncpa [#allocation4], 1 }

</bundles_post_ra>
